<compile_context>
chip_gen: v7x
topology: tpu7x:2x2x1
jax: 0.10.0
libtpu: 0.0.40
codegen_flags: <defaults>
</compile_context>

<pallas_src>
import functools

import jax
import jax.numpy as jnp
from jax.experimental import pallas as pl
from jax.experimental.pallas import tpu as pltpu

_C0 = 0.1992
_C1 = 0.5002
_C2 = 0.1997

_LANES = 128
_SUBLANES = 8
_MIB = 1024 * 1024

# Below this element count the Pallas launch / grid-step overhead dominates a
# pure-bandwidth op; fall back to the fused jnp expression (review item).
_SMALL_FALLBACK_ELEMENTS = 512 * 1024

# Wide lane-dimension candidates (widest first): fewer DMA descriptors per
# block and larger unmasked stores than growing the sublane dim alone.
_LANE_CANDIDATES = (8192, 4096, 2048, 1024, 512, 256, 128)


def _taylor_kernel(x_ref, o_ref):
    x = x_ref[...]
    # Same evaluation order as the PyTorch reference (not Horner, to stay
    # bit-exact):  0.1992 + x*0.5002 + (x*x)*0.1997  -> 3 mul + 2 add on VPU.
    o_ref[...] = _C0 + x * _C1 + (x * x) * _C2


def _taylor_jnp(x: jax.Array) -> jax.Array:
    """Fused elementwise reference / small-tensor + ragged-tail fallback."""
    return _C0 + x * _C1 + (x * x) * _C2


@functools.lru_cache(maxsize=1)
def _block_budget():
    """(target_block_bytes, vmem_limit_bytes), generation-aware."""
    kind = ""
    try:
        kind = jax.devices()[0].device_kind.lower()
    except Exception:  # pragma: no cover - e.g. no backend yet
        pass
    vmem_phys = None
    try:
        vmem_phys = int(pltpu.get_tpu_info().vmem_capacity_bytes)
    except Exception:  # pragma: no cover - API not available / not on TPU
        pass

    is_v7 = ("v7" in kind) or ("tpu7" in kind) or (
        vmem_phys is not None and vmem_phys <= 96 * _MIB)
    if is_v7:
        # v7x: 64 MiB VMEM per TC, ~3.2 TB/s HBM -> big blocks so the ~0.35 us
        # per-grid-step overhead is <10% of the ~5 us HBM time per block.
        return 8 * _MIB, 48 * _MIB
    if ("v6" in kind) or ("tpu6" in kind):
        # v6e: 4 MiB blocks; 2 arrays x 2 buffers = 16 MiB fits the 32 MiB
        # default scoped VMEM with headroom.
        return 4 * _MIB, 32 * _MIB
    # v5e (16 MiB default scoped VMEM) and unknown parts: conservative 2 MiB
    # blocks (8 MiB pipelined footprint) — safe everywhere, and at v5e's
    # ~0.8 TB/s the per-step overhead is already only a few percent.
    return 2 * _MIB, 16 * _MIB


def _taylor_pallas_flat(flat: jax.Array) -> jax.Array:
    """Run the Pallas kernel on a flat array whose length is a multiple of 128."""
    n = flat.shape[0]
    dtype = flat.dtype
    itemsize = jnp.dtype(dtype).itemsize
    block_bytes, vmem_limit = _block_budget()

    # Widest lane dimension that exactly divides the element count.
    lanes = next(l for l in _LANE_CANDIDATES if n % l == 0)
    rows = n // lanes
    x2d = flat.reshape(rows, lanes)

    # Rows per block: ~block_bytes of input per block, multiple of 8 sublanes.
    target_rows = max(
        _SUBLANES,
        (block_bytes // (lanes * itemsize)) // _SUBLANES * _SUBLANES,
    )
    if rows <= target_rows:
        if rows >= 2 * _SUBLANES:
            # Whole array fits in one block: still emit >= 2 grid steps so the
            # "parallel" axis can shard across both v7x TensorCores.
            tm = -(-((rows + 1) // 2) // _SUBLANES) * _SUBLANES
        else:
            tm = rows  # single block; sublane dim equals the full array dim
    else:
        tm = target_rows
    grid = pl.cdiv(rows, tm)  # boundary block (if any) is masked by Pallas

    out2d = pl.pallas_call(
        _taylor_kernel,
        out_shape=jax.ShapeDtypeStruct((rows, lanes), dtype),
        grid_spec=pltpu.PrefetchScalarGridSpec(
            num_scalar_prefetch=0,
            grid=(grid,),
            in_specs=[pl.BlockSpec((tm, lanes), lambda i: (i, 0))],
            out_specs=pl.BlockSpec((tm, lanes), lambda i: (i, 0)),
        ),
        compiler_params=pltpu.CompilerParams(
            dimension_semantics=("parallel",),
            vmem_limit_bytes=vmem_limit,
        ),
        cost_estimate=pl.CostEstimate(
            flops=5 * n,  # 3 mul + 2 add per element
            transcendentals=0,
            bytes_accessed=2 * n * itemsize,
        ),
    )(x2d)
    return out2d.reshape(-1)


def taylor_expansion(
    x: jax.Array, *, min_pallas_elements: int = _SMALL_FALLBACK_ELEMENTS
) -> jax.Array:
    """Elementwise Taylor expansion: 0.1992 + 0.5002*x + 0.1997*x**2."""
    n = x.size
    if n == 0 or n < min_pallas_elements:
        # Launch-overhead dominated regime: XLA's fused elementwise pass is
        # already at the HBM roofline (single read + write).
        return _taylor_jnp(x)

    flat = jnp.ravel(x)  # contiguous view of the NCHW tensor
    rem = n % _LANES
    if rem == 0:
        # Fast path: no pad / slice / concat — zero extra HBM passes.
        out_flat = _taylor_pallas_flat(flat)
    else:
        # Ragged path: kernel on the %128-aligned prefix, <128-element tail in
        # plain jnp (no full-tensor jnp.pad / [:n] slice passes).
        n_main = n - rem
        out_main = _taylor_pallas_flat(flat[:n_main])
        out_tail = _taylor_jnp(flat[n_main:])
        out_flat = jnp.concatenate([out_main, out_tail])

    return out_flat.reshape(x.shape)


def taylor_expansion_ref(x: jax.Array) -> jax.Array:
    return _C0 + x * _C1 + jnp.power(x, 2) * _C2


if __name__ == "__main__":
    key = jax.random.PRNGKey(0)

    # 1) Small NCHW input consistent with a PathMNIST-style feature map.
    #    Force the Pallas path (min_pallas_elements=0) so the kernel itself is
    #    exercised on TPU; element count (2048) is a multiple of 128.
    x = jax.random.normal(key, (2, 4, 16, 16), dtype=jnp.float32)
    y = jax.block_until_ready(taylor_expansion(x, min_pallas_elements=0))
    y_ref = taylor_expansion_ref(x)
    assert y.shape == x.shape and y.dtype == x.dtype
    assert jnp.allclose(y, y_ref, atol=1e-6, rtol=1e-6), "mismatch (aligned pallas path)"

    # 2) Awkward size (2*3*28*28 = 4704, not a multiple of 128) -> aligned
    #    prefix through the kernel + jnp tail.
    x2 = jax.random.normal(jax.random.PRNGKey(1), (2, 3, 28, 28), dtype=jnp.float32)
    y2 = jax.block_until_ready(taylor_expansion(x2, min_pallas_elements=0))
    y2_ref = taylor_expansion_ref(x2)
    assert y2.shape == x2.shape and y2.dtype == x2.dtype
    assert jnp.allclose(y2, y2_ref, atol=1e-6, rtol=1e-6), "mismatch (ragged pallas path)"

    # 3) Default path on the small input: small-tensor jnp fallback.
    y3 = jax.block_until_ready(taylor_expansion(x))
    assert jnp.allclose(y3, y_ref, atol=1e-6, rtol=1e-6), "mismatch (jnp fallback path)"

    # 4) Medium aligned tensor through the default path: multi-block grid with
    #    generation-aware block sizing (2 MiB f32 -> >= 2 grid steps).
    x4 = jax.random.normal(jax.random.PRNGKey(2), (4, 8, 128, 128), dtype=jnp.float32)
    y4 = jax.block_until_ready(taylor_expansion(x4))
    y4_ref = taylor_expansion_ref(x4)
    assert y4.shape == x4.shape and y4.dtype == x4.dtype
    assert jnp.allclose(y4, y4_ref, atol=1e-6, rtol=1e-6), "mismatch (multi-block path)"

    print("KERNEL_OK")
</pallas_src>

<mosaic_0001>
module attributes {stable_mosaic.version = 11 : i64} {
  func.func @_taylor_kernel(%arg0: i32, %arg1: memref<1x2048xf32, #tpu.memory_space<vmem>>, %arg2: memref<1x2048xf32, #tpu.memory_space<vmem>>) attributes {dimension_semantics = [#tpu.dimension_semantics<parallel>], iteration_bounds = array<i64: 1>, scalar_prefetch = 0 : i64, scratch_operands = 0 : i64, tpu.core_type = #tpu.core_type<tc>, window_params = [{transform_indices = @transform_0, window_bounds = array<i64: 1, 2048>}, {transform_indices = @transform_1, window_bounds = array<i64: 1, 2048>}]} {
    %c0 = arith.constant 0 : index
    %c0_0 = arith.constant 0 : index
    %0 = vector.load %arg1[%c0, %c0_0] : memref<1x2048xf32, #tpu.memory_space<vmem>>, vector<1x2048xf32>
    %cst = arith.constant 5.002000e-01 : f32
    %1 = vector.broadcast %cst : f32 to vector<1x2048xf32>
    %2 = arith.mulf %0, %1 : vector<1x2048xf32>
    %cst_1 = arith.constant 1.992000e-01 : f32
    %3 = vector.broadcast %cst_1 : f32 to vector<1x2048xf32>
    %4 = arith.addf %3, %2 : vector<1x2048xf32>
    %5 = arith.mulf %0, %0 : vector<1x2048xf32>
    %cst_2 = arith.constant 1.997000e-01 : f32
    %6 = vector.broadcast %cst_2 : f32 to vector<1x2048xf32>
    %7 = arith.mulf %5, %6 : vector<1x2048xf32>
    %8 = arith.addf %4, %7 : vector<1x2048xf32>
    %c0_3 = arith.constant 0 : index
    %c0_4 = arith.constant 0 : index
    %9 = vector.load %arg2[%c0_3, %c0_4] : memref<1x2048xf32, #tpu.memory_space<vmem>>, vector<1x2048xf32>
    tpu.vector_store %arg2[%c0_3, %c0_4], %8 {strides = array<i32>} : memref<1x2048xf32, #tpu.memory_space<vmem>>, vector<1x2048xf32>,
    return
  }
  func.func @transform_0(%arg0: i32) -> (i32, i32) {
    %c0_i32 = arith.constant 0 : i32
    %c0_i32_0 = arith.constant 0 : i32
    return %arg0, %c0_i32 : i32, i32
  }
  func.func @transform_1(%arg0: i32) -> (i32, i32) {
    %c0_i32 = arith.constant 0 : i32
    %c0_i32_0 = arith.constant 0 : i32
    return %arg0, %c0_i32 : i32, i32
  }
}

</mosaic_0001>

<bundles_post_ra>
// kernel: tpu_custom_call.1
= control target key start
LH: loop header
LB: loop body
LE: loop exit
PB: predicated region body
PF: predicated region fallthrough
CT: control target
= control target key end

     0   :  { %6 = vsyncpa [#allocation3], 0  ;;  %s136_s0 = inlined_call_operand.hbm [shape: f32[1,2048], index: 0, kind: input, shape index: {}]   ;;  %s137_s1 = inlined_call_operand.hbm [shape: f32[1,2048], index: 1, kind: output, shape index: {}]  }
   0x1   :  { %7 = vsyncpa [#allocation4], 0  ;;  %s100_s6 = smov [#allocation2]   ;;  %s52_s10 = scalar_lea.hbm %s136_s0, 256 }
   0x2   :  { %s14_s7 = sshll.u32 %s100_s6, 4  ;;  %p53_p0 = scmp.ne.s32.totalorder %s136_s0, %s52_s10  ;;  %s15_s7 = int_to_ptr.vmem [resolvable:$true] %s14_s7 }
   0x3   :  { %p56_p1 = scmp.lt.u32.totalorder %s52_s10, %s136_s0 }
   0x5   :  { %p58_p2 = pnand %p56_p1, %p53_p0 }
   0x7   :  { %61 = shalt.err (!%p58_p2)
}
   0x8   :  { %s62_s15 = scalar_lea.vmem %s15_s7, 256  ;;  %p67_p4 = scmp.lt.s32.totalorder %s15_s7, %s15_s7 }
   0x9   :  { %p63_p3 = scmp.ne.s32.totalorder %s15_s7, %s62_s15  ;;  %p68_p5 = scmp.lt.s32.totalorder %s62_s15, %s62_s15 }
   0xb   :  { %p69_p6 = por %p68_p5, %p67_p4 }
   0xd   :  { %p70_p7 = pnand %p69_p6, %p63_p3 }
   0xf   :  { %73 = shalt.err (!%p70_p7)
}
  0x10   :  { %17 = dma.hbm_to_vmem [thread:$0]  %s136_s0, 256, %s15_s7, [#allocation3]  }
  0x11   :  { %96 = dma.done.wait [#allocation3], 256  }
  0x12   :  { %97 = vsyncadd [#allocation3], 4294967040  ;;  %v21_v0 = vld [vmem:[#allocation2] sm:$0xff]  ;;  %v22_v1 = vld [vmem:[#allocation2 + $0x8] sm:$0xff]  ;;  %s101_s18 = smov [#allocation5]  }
  0x13   :  { %v23_v2 = vmul.f32 0.5002, %v21_v0  ;;  %v27_v3 = vmul.f32 %v21_v0, %v21_v0  ;;  %v24_v4 = vmul.f32 0.5002, %v22_v1  ;;  %v28_v5 = vmul.f32 %v22_v1, %v22_v1  ;;  %s41_s19 = sshll.u32 %s101_s18, 4  ;;  %s42_s19 = int_to_ptr.vmem [resolvable:$true] %s41_s19 }
  0x14   :  { %s74_s0 = scalar_lea.vmem %s42_s19, 256  ;;  %p79_p9 = scmp.lt.s32.totalorder %s42_s19, %s42_s19 }
  0x15   :  { %v25_v6 = vadd.f32 0.1992, %v23_v2  ;;  %v29_v7 = vmul.f32 0.1997, %v27_v3  ;;  %v26_v8 = vadd.f32 0.1992, %v24_v4  ;;  %p75_p8 = scmp.ne.s32.totalorder %s42_s19, %s74_s0  ;;  %p80_p10 = scmp.lt.s32.totalorder %s74_s0, %s74_s0 }
  0x16   :  { %v30_v9 = vmul.f32 0.1997, %v28_v5 }
  0x17   :  { %v31_v10 = vadd.f32 %v29_v7, %v25_v6  ;;  %p81_p11 = por %p80_p10, %p79_p9 }
  0x18   :  { %v32_v11 = vadd.f32 %v30_v9, %v26_v8 }
  0x19   :  { %33 = vst [vmem:[#allocation5] sm:$0xff] %v31_v10  ;;  %p82_p12 = pnand %p81_p11, %p75_p8 }
  0x1a   :  { %34 = vst [vmem:[#allocation5 + $0x8] sm:$0xff] %v32_v11 }
  0x1b   :  { %85 = shalt.err (!%p82_p12)
}
  0x1c   :  { %s86_s22 = scalar_lea.hbm %s137_s1, 256 }
  0x1d   :  { %p87_p13 = scmp.ne.s32.totalorder %s137_s1, %s86_s22  ;;  %p90_p0 = scmp.lt.u32.totalorder %s86_s22, %s137_s1 }
  0x1f   :  { %p92_p1 = pnand %p90_p0, %p87_p13 }
  0x21   :  { %95 = shalt.err (!%p92_p1)
}
  0x22   :  { %44 = dma.vmem_to_hbm [thread:$0]  %s42_s19, 256, %s137_s1, [#allocation4]  }
  0x23   :  { %98 = dma.done.wait [#allocation4], 256  }
  0x24   :  { %99 = vsyncadd [#allocation4], 4294967040 }
  0x25   :  { %48 = vsyncpa [#allocation3], 1 }
  0x26   :  { %49 = vsyncpa [#allocation4], 1 }

</bundles_post_ra>
